<compile_context>
chip_gen: v6e
topology: v6e:2x2x1
jax: 0.10.0
libtpu: 0.0.40
codegen_flags: <defaults>
</compile_context>

<pallas_src>
import math

import jax
import jax.numpy as jnp
from jax.experimental import pallas as pl
from jax.experimental.pallas import tpu as pltpu


_BLOCK_BYTES_CAP = 4 * 1024 * 1024     # per-block VMEM footprint cap
_VMEM_LIMIT_BYTES = 32 * 1024 * 1024   # 2 in-bufs + 2 out-bufs + headroom
_LANE_CAP = 4096                       # lane width cap (multiple of 128)


def _copy_kernel(x_ref, o_ref):
    # Pure lane-dense block copy: (TR, L) in -> (TR, L) out.
    o_ref[...] = x_ref[...]


def _plan_slab(n_elems, itemsize):
    """Choose a lane/sublane-dense (rows, lane) slab layout and a row tile
    for a streaming copy of `n_elems` contiguous elements."""
    pack = max(1, 4 // itemsize)       # rows packed per 32-bit sublane group
    s_mult = 8 * pack                  # dense sublane tile multiple (8/16/32)

    # Lane (last) dim: big multiple of 128 (unmasked stores), but small enough
    # that the row count stays at least one dense sublane group when possible.
    lane = (n_elems // (s_mult * 128)) * 128
    lane = max(128, min(_LANE_CAP, lane))

    rows = pl.cdiv(n_elems, lane)
    n_padded = rows * lane

    # Row tile: multiple of s_mult (or the full extent), capped so one block
    # stays within _BLOCK_BYTES_CAP.
    rows_cap = max(
        s_mult, (_BLOCK_BYTES_CAP // (lane * itemsize) // s_mult) * s_mult
    )
    if rows <= rows_cap:
        tile_rows = rows
        # v7x: keep >= 2 blocks on the "parallel" axis for big single blocks,
        # so both TensorCores issue DMAs concurrently.
        if rows >= 2 * s_mult and rows * lane * itemsize > (2 * 1024 * 1024):
            tile_rows = pl.cdiv(pl.cdiv(rows, 2), s_mult) * s_mult
    else:
        tile_rows = rows_cap
    return lane, rows, n_padded, tile_rows


def flatten(x: jax.Array, *, materialize: bool = True) -> jax.Array:
    """Pallas equivalent of Flatten.forward: (B, ...) -> (B, prod(...)).

    materialize=False: zero-cost metadata reshape (recommended; == torch .view).
    materialize=True : result produced by a lane-dense Pallas streaming copy.
    """
    batch = x.shape[0]
    feat = math.prod(x.shape[1:]) if x.ndim > 1 else 1

    if not materialize:
        return jnp.reshape(x, (batch, feat))

    itemsize = jnp.dtype(x.dtype).itemsize
    n = batch * feat
    lane, rows, n_padded, tile_rows = _plan_slab(n, itemsize)

    # Present the contiguous buffer as a dense 2-D slab (wrapper-side layout
    # plumbing; pad the ragged tail once if needed).
    flat = jnp.reshape(x, (-1,))
    if n_padded != n:
        flat = jnp.pad(flat, (0, n_padded - n))
    slab = jnp.reshape(flat, (rows, lane))

    grid = (pl.cdiv(rows, tile_rows),)
    out_slab = pl.pallas_call(
        _copy_kernel,
        out_shape=jax.ShapeDtypeStruct((rows, lane), x.dtype),
        grid_spec=pltpu.PrefetchScalarGridSpec(
            num_scalar_prefetch=0,
            grid=grid,
            in_specs=[pl.BlockSpec((tile_rows, lane), lambda i: (i, 0))],
            out_specs=pl.BlockSpec((tile_rows, lane), lambda i: (i, 0)),
        ),
        compiler_params=pltpu.CompilerParams(
            dimension_semantics=("parallel",),
            vmem_limit_bytes=_VMEM_LIMIT_BYTES,
        ),
    )(slab)

    out = jnp.reshape(out_slab, (-1,))
    if n_padded != n:
        out = out[:n]
    return jnp.reshape(out, (batch, feat))


if __name__ == "__main__":
    key = jax.random.PRNGKey(0)
    # Small NCHW input consistent with the module's intended use.
    x = jax.random.normal(key, (2, 4, 16, 16), dtype=jnp.float32)

    out = jax.block_until_ready(flatten(x))               # Pallas copy path
    ref = x.reshape(x.shape[0], -1)
    assert out.shape == ref.shape, (out.shape, ref.shape)
    assert out.dtype == ref.dtype
    assert bool(jnp.all(out == ref))

    out_view = jax.block_until_ready(flatten(x, materialize=False))
    assert out_view.shape == ref.shape
    assert bool(jnp.all(out_view == ref))

    print("KERNEL_OK")
</pallas_src>

<mosaic_0001>
module attributes {stable_mosaic.version = 11 : i64} {
  func.func @_copy_kernel(%arg0: i32, %arg1: memref<8x256xf32, #tpu.memory_space<vmem>>, %arg2: memref<8x256xf32, #tpu.memory_space<vmem>>) attributes {dimension_semantics = [#tpu.dimension_semantics<parallel>], iteration_bounds = array<i64: 1>, scalar_prefetch = 0 : i64, scratch_operands = 0 : i64, tpu.core_type = #tpu.core_type<tc>, window_params = [{transform_indices = @transform_0, window_bounds = array<i64: 8, 256>}, {transform_indices = @transform_1, window_bounds = array<i64: 8, 256>}]} {
    %c0 = arith.constant 0 : index
    %c0_0 = arith.constant 0 : index
    %0 = vector.load %arg1[%c0, %c0_0] : memref<8x256xf32, #tpu.memory_space<vmem>>, vector<8x256xf32>
    %c0_1 = arith.constant 0 : index
    %c0_2 = arith.constant 0 : index
    %1 = vector.load %arg2[%c0_1, %c0_2] : memref<8x256xf32, #tpu.memory_space<vmem>>, vector<8x256xf32>
    tpu.vector_store %arg2[%c0_1, %c0_2], %0 {strides = array<i32>} : memref<8x256xf32, #tpu.memory_space<vmem>>, vector<8x256xf32>,
    return
  }
  func.func @transform_0(%arg0: i32) -> (i32, i32) {
    %c0_i32 = arith.constant 0 : i32
    %c0_i32_0 = arith.constant 0 : i32
    return %arg0, %c0_i32 : i32, i32
  }
  func.func @transform_1(%arg0: i32) -> (i32, i32) {
    %c0_i32 = arith.constant 0 : i32
    %c0_i32_0 = arith.constant 0 : i32
    return %arg0, %c0_i32 : i32, i32
  }
}

</mosaic_0001>

<bundles_post_ra>
// kernel: tpu_custom_call.1
= control target key start
LH: loop header
LB: loop body
LE: loop exit
PB: predicated region body
PF: predicated region fallthrough
CT: control target
= control target key end

     0   :  { %6 = vsyncpa [#allocation3], 0  ;;  %s104_s0 = inlined_call_operand.hbm [shape: f32[8,256], index: 0, kind: input, shape index: {}]   ;;  %s105_s1 = inlined_call_operand.hbm [shape: f32[8,256], index: 1, kind: output, shape index: {}]  }
   0x1   :  { %7 = vsyncpa [#allocation4], 0  ;;  %s86_s6 = smov [#allocation2]  }
   0x2   :  { %s14_s7 = sshll.u32 %s86_s6, 4  ;;  %s15_s7 = int_to_ptr.vmem [resolvable:$true] %s14_s7 }
   0x3   :  { %s50_s8 = scalar_lea.vmem %s15_s7, 256  ;;  %p55_p1 = scmp.lt.s32.totalorder %s15_s7, %s15_s7 }
   0x4   :  { %p51_p0 = scmp.ne.s32.totalorder %s15_s7, %s50_s8  ;;  %p56_p2 = scmp.lt.s32.totalorder %s50_s8, %s50_s8 }
   0x6   :  { %p57_p3 = por %p56_p2, %p55_p1 }
   0x8   :  { %p58_p4 = pnand %p57_p3, %p51_p0 }
   0xa   :  { %61 = shalt.err (!%p58_p4)
}
   0xb   :  { %17 = dma.hbm_to_vmem [thread:$0]  %s104_s0, 256, %s15_s7, [#allocation3]  }
   0xc   :  { %82 = dma.done.wait [#allocation3], 256  }
   0xd   :  { %83 = vsyncadd [#allocation3], 4294967040  ;;  %s87_s11 = smov [#allocation5]   ;;  %v21_v0 = vld [vmem:[#allocation2] sm:$0xff]  ;;  %v22_v1 = vld [vmem:[#allocation2 + $0x8] sm:$0xff] }
   0xe   :  { %s31_s12 = sshll.u32 %s87_s11, 4  ;;  %23 = vst [vmem:[#allocation5] sm:$0xff] %v21_v0  ;;  %24 = vst [vmem:[#allocation5 + $0x8] sm:$0xff] %v22_v1  ;;  %s32_s12 = int_to_ptr.vmem [resolvable:$true] %s31_s12 }
   0xf   :  { %s62_s13 = scalar_lea.vmem %s32_s12, 256  ;;  %p67_p6 = scmp.lt.s32.totalorder %s32_s12, %s32_s12 }
  0x10   :  { %p63_p5 = scmp.ne.s32.totalorder %s32_s12, %s62_s13  ;;  %p68_p7 = scmp.lt.s32.totalorder %s62_s13, %s62_s13 }
  0x12   :  { %p69_p8 = por %p68_p7, %p67_p6 }
  0x14   :  { %p70_p9 = pnand %p69_p8, %p63_p5 }
  0x16   :  { %73 = shalt.err (!%p70_p9)
}
  0x17   :  { %34 = dma.vmem_to_hbm [thread:$0]  %s32_s12, 256, %s105_s1, [#allocation4]  }
  0x18   :  { %84 = dma.done.wait [#allocation4], 256  }
  0x19   :  { %85 = vsyncadd [#allocation4], 4294967040 }
  0x1a   :  { %38 = vsyncpa [#allocation3], 1 }
  0x1b   :  { %39 = vsyncpa [#allocation4], 1 }

</bundles_post_ra>
